<compile_context>
chip_gen: v7x
topology: tpu7x:2x2x1
jax: 0.10.0
libtpu: 0.0.40
codegen_flags: <defaults>
</compile_context>

<pallas_src>
import functools

import jax
import jax.numpy as jnp
from jax.experimental import pallas as pl
from jax.experimental.pallas import tpu as pltpu

LN_EPS = 1e-12  # bert_config.layer_norm_eps


def _head_transform(x_bf16, wd_bf16, bd, gamma, beta):
    """BertPredictionHeadTransform: Linear -> ReLU -> LayerNorm (f32 math)."""
    h = jnp.dot(x_bf16, wd_bf16, preferred_element_type=jnp.float32) + bd
    h = jnp.maximum(h, 0.0)
    mu = jnp.mean(h, axis=-1, keepdims=True)
    var = jnp.mean(jnp.square(h - mu), axis=-1, keepdims=True)
    h = (h - mu) * jax.lax.rsqrt(var + LN_EPS)
    return h * gamma + beta


def _softmax_rows(logits):
    m = jnp.max(logits, axis=-1, keepdims=True)
    p = jnp.exp(logits - m)
    return p * (1.0 / jnp.sum(p, axis=-1, keepdims=True))


# ---------------------------------------------------------------------------
# Fused kernel. Grid = (batch tiles [parallel], experts [arbitrary]).
# Expert step 0 additionally computes the router softmax for the tile.
# Resident (Btile, Lpad) accumulator holds prob_expert; per-(tile, expert)
# partial batch-mean probs go to an (nb, E, 1, Lpad) output.
# ---------------------------------------------------------------------------
def mos_fused_kernel(cls_ref, mask_ref,
                     r_wd_ref, r_bd_ref, r_g_ref, r_b_ref, r_w_ref,
                     e_wd_ref, e_bd_ref, e_g_ref, e_b_ref,
                     c_w_ref, c_b_ref,
                     rdist_ref, pacc_ref, pmean_ref,
                     rd_t_ref,
                     *, inv_b):
    e = pl.program_id(1)
    x_bf = cls_ref[...]                                            # (Bt, H) bf16

    @pl.when(e == 0)
    def _router():
        h_r = _head_transform(x_bf, r_wd_ref[...], r_bd_ref[...],
                              r_g_ref[...], r_b_ref[...])
        logits = jnp.dot(h_r.astype(jnp.bfloat16), r_w_ref[...],
                         preferred_element_type=jnp.float32)       # (Bt, E)
        rdist = _softmax_rows(logits)
        rdist_ref[...] = rdist
        # Stash transposed router dist as (E, Bt, 1) so each expert step reads
        # its weight column with a zero-cost dynamic first-axis index.
        n_exp = rd_t_ref.shape[0]
        row = jax.lax.broadcasted_iota(jnp.int32, (n_exp, 1, n_exp), 0)
        col = jax.lax.broadcasted_iota(jnp.int32, (n_exp, 1, n_exp), 2)
        rd_t_ref[...] = jnp.sum(
            jnp.where(row == col, rdist[None, :, :], 0.0),
            axis=-1, keepdims=True)                                # (E, Bt, 1)

    # Expert e: transform -> classifier -> softmax (padded lanes at -1e30 bias
    # -> exactly zero probability).
    h = _head_transform(x_bf, e_wd_ref[0], e_bd_ref[0], e_g_ref[0], e_b_ref[0])
    logits = jnp.dot(h.astype(jnp.bfloat16), c_w_ref[0],
                     preferred_element_type=jnp.float32) + c_b_ref[0]
    prob_i = _softmax_rows(logits)                                 # (Bt, Lp) f32

    w = rd_t_ref[e]                                                # (Bt, 1)

    # Per-(tile, expert) partial batch-mean over the *real* rows only.
    pmean_ref[...] = (jnp.sum(prob_i * mask_ref[...], axis=0, keepdims=True)
                      * inv_b)[None, None]                         # (1,1,1,Lp)

    @pl.when(e == 0)
    def _init():
        pacc_ref[...] = prob_i * w          # prob_expert accumulator

    @pl.when(e > 0)
    def _acc():
        pacc_ref[...] += prob_i * w


# ---------------------------------------------------------------------------
# Wrapper around the single fused pallas_call
# ---------------------------------------------------------------------------
def run_mos_head(cls_pad, mask, params, cls_w_pad, cls_b_pad, b_real, b_tile):
    b_pad, h = cls_pad.shape
    e_num, _, l_pad = cls_w_pad.shape
    nb = b_pad // b_tile

    kernel = functools.partial(mos_fused_kernel, inv_b=1.0 / b_real)

    grid_spec = pltpu.PrefetchScalarGridSpec(
        num_scalar_prefetch=0,
        grid=(nb, e_num),
        in_specs=[
            pl.BlockSpec((b_tile, h), lambda b, e: (b, 0)),       # cls (bf16)
            pl.BlockSpec((b_tile, 1), lambda b, e: (b, 0)),       # real-row mask
            pl.BlockSpec((h, h), lambda b, e: (0, 0)),            # router dense W (bf16)
            pl.BlockSpec((1, h), lambda b, e: (0, 0)),            # router dense b
            pl.BlockSpec((1, h), lambda b, e: (0, 0)),            # router LN gamma
            pl.BlockSpec((1, h), lambda b, e: (0, 0)),            # router LN beta
            pl.BlockSpec((h, e_num), lambda b, e: (0, 0)),        # router proj W (bf16)
            pl.BlockSpec((1, h, h), lambda b, e: (e, 0, 0)),      # expert dense W (bf16)
            pl.BlockSpec((1, 1, h), lambda b, e: (e, 0, 0)),      # expert dense b
            pl.BlockSpec((1, 1, h), lambda b, e: (e, 0, 0)),      # expert LN gamma
            pl.BlockSpec((1, 1, h), lambda b, e: (e, 0, 0)),      # expert LN beta
            pl.BlockSpec((1, h, l_pad), lambda b, e: (e, 0, 0)),  # classifier W (bf16, lane-padded)
            pl.BlockSpec((1, 1, l_pad), lambda b, e: (e, 0, 0)),  # classifier b (-1e30 pad)
        ],
        out_specs=[
            pl.BlockSpec((b_tile, e_num), lambda b, e: (b, 0)),         # router_dist
            pl.BlockSpec((b_tile, l_pad), lambda b, e: (b, 0)),         # prob_expert
            pl.BlockSpec((1, 1, 1, l_pad), lambda b, e: (b, e, 0, 0)),  # partial means
        ],
        scratch_shapes=[pltpu.VMEM((e_num, b_tile, 1), jnp.float32)],
    )

    out_shape = (
        jax.ShapeDtypeStruct((b_pad, e_num), jnp.float32),
        jax.ShapeDtypeStruct((b_pad, l_pad), jnp.float32),
        jax.ShapeDtypeStruct((nb, e_num, 1, l_pad), jnp.float32),
    )

    flops = nb * (2 * b_tile * h * (h + e_num)
                  + e_num * 2 * b_tile * h * (h + l_pad))
    transcend = nb * b_tile * (e_num + e_num * l_pad + (e_num + 1))
    bytes_acc = (2 * (h * h * (e_num + 1) + h * e_num + e_num * h * l_pad)  # bf16 weights
                 + 2 * b_pad * h                                            # bf16 cls
                 + 4 * (4 * (e_num + 1) * h + e_num * l_pad + b_pad)        # f32 small params/mask
                 + 4 * (b_pad * e_num + b_pad * l_pad + nb * e_num * l_pad))  # outputs

    return pl.pallas_call(
        kernel,
        grid_spec=grid_spec,
        out_shape=out_shape,
        compiler_params=pltpu.CompilerParams(
            dimension_semantics=("parallel", "arbitrary"),
            vmem_limit_bytes=48 * 1024 * 1024,
        ),
        cost_estimate=pl.CostEstimate(
            flops=flops, transcendentals=transcend, bytes_accessed=bytes_acc),
    )(cls_pad, mask,
      params["router_wd"], params["router_bd"], params["router_g"],
      params["router_b"], params["router_w"],
      params["exp_wd"], params["exp_bd"], params["exp_g"], params["exp_b"],
      cls_w_pad, cls_b_pad)


def router_topk_mask(x, k):
    k = min(k, x.shape[1])
    topk_vals = jax.lax.top_k(x, k)[0]
    return (x < topk_vals[:, -1:]).astype(jnp.float32)   # strict less-than, as torch.lt


@functools.partial(jax.jit, static_argnames=("num_topk_mask",))
def model_forward(cls, target, params, num_topk_mask):
    """Eval-mode forward of Model (prob_mode='expert')."""
    b, _ = cls.shape
    e_num, _, l = params["cls_w"].shape

    # Batch padding: multiple of 16 (bf16 sublane packing); 128-row tiles for
    # larger batches (bounds the LN vreg working set; "parallel" tile axis
    # uses the second TensorCore on v7x).
    b_pad = ((b + 15) // 16) * 16
    if b_pad > 128:
        b_pad = ((b_pad + 127) // 128) * 128
        b_tile = 128
    else:
        b_tile = b_pad

    # Lane-dense outputs: pad num_labels to a multiple of 128. Padded logit
    # lanes are driven to -1e30 through the classifier bias so the softmax
    # assigns them exactly zero probability.
    l_pad = ((l + 127) // 128) * 128
    cls_w_pad = jnp.pad(params["cls_w"], ((0, 0), (0, 0), (0, l_pad - l)))
    cls_b_pad = jnp.pad(params["cls_b"], ((0, 0), (0, 0), (0, l_pad - l)),
                        constant_values=-1e30)

    cls_pad = jnp.pad(cls, ((0, b_pad - b), (0, 0))).astype(jnp.bfloat16)
    mask = (jnp.arange(b_pad, dtype=jnp.int32)[:, None] < b).astype(jnp.float32)

    rdist_pad, pacc, pmean_part = run_mos_head(
        cls_pad, mask, params, cls_w_pad, cls_b_pad, b, b_tile)

    router_dist = rdist_pad[:b]
    prob_expert = pacc[:b, :l]
    # TODO(synk): prob_uniform / prob_argmin (eval-mode extras) are not
    # computed — unused in the prob_mode='expert' path (removed per review).

    # router similarity loss (small B x B; plain JAX glue)
    sim = jnp.matmul(router_dist, router_dist.T)
    sim_mask = 1.0 - jnp.eye(b, dtype=jnp.float32)
    sim = sim * sim_mask
    if num_topk_mask > 0:
        sim = sim * router_topk_mask(sim, num_topk_mask)
    router_loss = jnp.sqrt(jnp.sum(sim ** 2)) / jnp.sqrt(jnp.sum(sim_mask ** 2))

    # NLLLoss(log(prob_expert + 1e-8), target), mean reduction
    logp = jnp.log(prob_expert + 1e-8)
    nll = -jnp.mean(jnp.take_along_axis(logp, target[:, None], axis=1))

    prob_mean = jnp.sum(pmean_part, axis=0)[:, 0, :l]     # (E, L) full-batch mean
    loss_dict = {
        "RouterDist": router_dist,
        "RouterLoss": router_loss,
        "ExpertOutDist": prob_mean.reshape(1, e_num, l),
        "ClassifierLoss": nll,
    }
    loss = nll            # eval mode: router_loss not added
    prob = prob_expert    # prob_mode='expert'
    return prob, loss, loss_dict


def init_params(key, h, e_num, l):
    ks = jax.random.split(key, 6)
    s = 0.02
    f32, bf16 = jnp.float32, jnp.bfloat16
    return {
        # router head: BertPredictionHeadTransform + Linear(H -> E, no bias)
        "router_wd": (jax.random.normal(ks[0], (h, h), f32) * s).astype(bf16),
        "router_bd": jnp.zeros((1, h), f32),
        "router_g": jnp.ones((1, h), f32),
        "router_b": jnp.zeros((1, h), f32),
        "router_w": (jax.random.normal(ks[1], (h, e_num), f32) * s).astype(bf16),
        # per-expert BertPredictionHeadTransform
        "exp_wd": (jax.random.normal(ks[2], (e_num, h, h), f32) * s).astype(bf16),
        "exp_bd": jax.random.normal(ks[3], (e_num, 1, h), f32) * s,
        "exp_g": jnp.ones((e_num, 1, h), f32),
        "exp_b": jnp.zeros((e_num, 1, h), f32),
        # per-expert classifier (bias init to 0.0 as in the module)
        "cls_w": (jax.random.normal(ks[4], (e_num, h, l), f32) * s).astype(bf16),
        "cls_b": jnp.zeros((e_num, 1, l), f32),
    }


if __name__ == "__main__":
    B, H, E, L = 4, 32, 4, 8          # batch, hidden_size, num_experts, num_labels
    NUM_TOPK_MASK = 2

    key = jax.random.PRNGKey(0)
    k_cls, k_tgt, k_par = jax.random.split(key, 3)
    cls = jax.random.normal(k_cls, (B, H), jnp.float32)       # CLS hidden state
    target = jax.random.randint(k_tgt, (B,), 0, L, jnp.int32)
    params = init_params(k_par, H, E, L)

    prob, loss, loss_dict = model_forward(cls, target, params, NUM_TOPK_MASK)
    jax.block_until_ready((prob, loss, loss_dict))

    assert prob.shape == (B, L)
    assert loss_dict["RouterDist"].shape == (B, E)
    assert loss_dict["ExpertOutDist"].shape == (1, E, L)
    # sanity: mixture probabilities roughly sum to 1 per row
    assert jnp.allclose(jnp.sum(prob, axis=-1), 1.0, atol=1e-4)
    print("KERNEL_OK")
</pallas_src>

<mosaic_0001>
module attributes {stable_mosaic.version = 11 : i64} {
  func.func @mos_fused_kernel(%arg0: i32, %arg1: i32, %arg2: memref<16x32xbf16, #tpu.memory_space<vmem>>, %arg3: memref<16x1xf32, #tpu.memory_space<vmem>>, %arg4: memref<32x32xbf16, #tpu.memory_space<vmem>>, %arg5: memref<1x32xf32, #tpu.memory_space<vmem>>, %arg6: memref<1x32xf32, #tpu.memory_space<vmem>>, %arg7: memref<1x32xf32, #tpu.memory_space<vmem>>, %arg8: memref<32x4xbf16, #tpu.memory_space<vmem>>, %arg9: memref<1x32x32xbf16, #tpu.memory_space<vmem>>, %arg10: memref<1x1x32xf32, #tpu.memory_space<vmem>>, %arg11: memref<1x1x32xf32, #tpu.memory_space<vmem>>, %arg12: memref<1x1x32xf32, #tpu.memory_space<vmem>>, %arg13: memref<1x32x128xbf16, #tpu.memory_space<vmem>>, %arg14: memref<1x1x128xf32, #tpu.memory_space<vmem>>, %arg15: memref<16x4xf32, #tpu.memory_space<vmem>>, %arg16: memref<16x128xf32, #tpu.memory_space<vmem>>, %arg17: memref<1x1x1x128xf32, #tpu.memory_space<vmem>>, %arg18: memref<4x16x1xf32, #tpu.memory_space<vmem>>) attributes {dimension_semantics = [#tpu.dimension_semantics<parallel>, #tpu.dimension_semantics<arbitrary>], iteration_bounds = array<i64: 1, 4>, scalar_prefetch = 0 : i64, scratch_operands = 1 : i64, tpu.core_type = #tpu.core_type<tc>, window_params = [{transform_indices = @transform_0, window_bounds = array<i64: 16, 32>}, {transform_indices = @transform_1, window_bounds = array<i64: 16, 1>}, {pipeline_mode = #tpu.pipeline_mode<synchronous>, transform_indices = @transform_2, window_bounds = array<i64: 32, 32>}, {pipeline_mode = #tpu.pipeline_mode<synchronous>, transform_indices = @transform_3, window_bounds = array<i64: 1, 32>}, {pipeline_mode = #tpu.pipeline_mode<synchronous>, transform_indices = @transform_4, window_bounds = array<i64: 1, 32>}, {pipeline_mode = #tpu.pipeline_mode<synchronous>, transform_indices = @transform_5, window_bounds = array<i64: 1, 32>}, {pipeline_mode = #tpu.pipeline_mode<synchronous>, transform_indices = @transform_6, window_bounds = array<i64: 32, 4>}, {transform_indices = @transform_7, window_bounds = array<i64: 1, 32, 32>}, {transform_indices = @transform_8, window_bounds = array<i64: 1, 1, 32>}, {transform_indices = @transform_9, window_bounds = array<i64: 1, 1, 32>}, {transform_indices = @transform_10, window_bounds = array<i64: 1, 1, 32>}, {transform_indices = @transform_11, window_bounds = array<i64: 1, 32, 128>}, {transform_indices = @transform_12, window_bounds = array<i64: 1, 1, 128>}, {transform_indices = @transform_13, window_bounds = array<i64: 16, 4>}, {transform_indices = @transform_14, window_bounds = array<i64: 16, 128>}, {transform_indices = @transform_15, window_bounds = array<i64: 1, 1, 1, 128>}]} {
    %c0 = arith.constant 0 : index
    %c0_0 = arith.constant 0 : index
    %0 = vector.load %arg2[%c0, %c0_0] : memref<16x32xbf16, #tpu.memory_space<vmem>>, vector<16x32xbf16>
    %c0_i32 = arith.constant 0 : i32
    %1 = arith.cmpi eq, %arg1, %c0_i32 : i32
    %2 = arith.extui %1 : i1 to i32
    %c0_i32_1 = arith.constant 0 : i32
    %3 = arith.cmpi ne, %2, %c0_i32_1 : i32
    scf.if %3 {
      %c0_44 = arith.constant 0 : index
      %c0_45 = arith.constant 0 : index
      %76 = vector.load %arg4[%c0_44, %c0_45] : memref<32x32xbf16, #tpu.memory_space<vmem>>, vector<32x32xbf16>
      %c0_46 = arith.constant 0 : index
      %c0_47 = arith.constant 0 : index
      %77 = vector.load %arg5[%c0_46, %c0_47] : memref<1x32xf32, #tpu.memory_space<vmem>>, vector<1x32xf32>
      %c0_48 = arith.constant 0 : index
      %c0_49 = arith.constant 0 : index
      %78 = vector.load %arg6[%c0_48, %c0_49] : memref<1x32xf32, #tpu.memory_space<vmem>>, vector<1x32xf32>
      %c0_50 = arith.constant 0 : index
      %c0_51 = arith.constant 0 : index
      %79 = vector.load %arg7[%c0_50, %c0_51] : memref<1x32xf32, #tpu.memory_space<vmem>>, vector<1x32xf32>
      %cst_52 = arith.constant dense<0.000000e+00> : vector<16x32xf32>
      %80 = tpu.matmul %0, %76, %cst_52 {dimension_numbers = #tpu.dot_dimension_numbers<[1], [0], [0], [1], [0, 0, 1, 1], [], []>} : vector<16x32xbf16>, vector<32x32xbf16>, vector<16x32xf32> -> vector<16x32xf32>
      %81 = vector.broadcast %77 : vector<1x32xf32> to vector<16x32xf32>
      %82 = arith.addf %80, %81 : vector<16x32xf32>
      %cst_53 = arith.constant 0.000000e+00 : f32
      %83 = vector.broadcast %cst_53 : f32 to vector<16x32xf32>
      %84 = arith.maximumf %82, %83 : vector<16x32xf32>
      %cst_54 = arith.constant dense<0.000000e+00> : vector<16xf32>
      %85 = vector.multi_reduction <add>, %84, %cst_54 [1] : vector<16x32xf32> to vector<16xf32>
      %86 = vector.shape_cast %85 : vector<16xf32> to vector<16x1xf32>
      %cst_55 = arith.constant 3.200000e+01 : f32
      %87 = vector.broadcast %cst_55 : f32 to vector<16x1xf32>
      %88 = arith.divf %86, %87 : vector<16x1xf32>
      %89 = vector.broadcast %88 : vector<16x1xf32> to vector<16x32xf32>
      %90 = arith.subf %84, %89 : vector<16x32xf32>
      %91 = arith.mulf %90, %90 : vector<16x32xf32>
      %cst_56 = arith.constant dense<0.000000e+00> : vector<16xf32>
      %92 = vector.multi_reduction <add>, %91, %cst_56 [1] : vector<16x32xf32> to vector<16xf32>
      %93 = vector.shape_cast %92 : vector<16xf32> to vector<16x1xf32>
      %cst_57 = arith.constant 3.200000e+01 : f32
      %94 = vector.broadcast %cst_57 : f32 to vector<16x1xf32>
      %95 = arith.divf %93, %94 : vector<16x1xf32>
      %96 = vector.broadcast %88 : vector<16x1xf32> to vector<16x32xf32>
      %97 = arith.subf %84, %96 : vector<16x32xf32>
      %cst_58 = arith.constant 9.99999996E-13 : f32
      %98 = vector.broadcast %cst_58 : f32 to vector<16x1xf32>
      %99 = arith.addf %95, %98 : vector<16x1xf32>
      %100 = math.rsqrt %99 : vector<16x1xf32>
      %101 = vector.broadcast %100 : vector<16x1xf32> to vector<16x32xf32>
      %102 = arith.mulf %97, %101 : vector<16x32xf32>
      %103 = vector.broadcast %78 : vector<1x32xf32> to vector<16x32xf32>
      %104 = arith.mulf %102, %103 : vector<16x32xf32>
      %105 = vector.broadcast %79 : vector<1x32xf32> to vector<16x32xf32>
      %106 = arith.addf %104, %105 : vector<16x32xf32>
      %107 = arith.truncf %106 : vector<16x32xf32> to vector<16x32xbf16>
      %c0_59 = arith.constant 0 : index
      %c0_60 = arith.constant 0 : index
      %108 = vector.load %arg8[%c0_59, %c0_60] : memref<32x4xbf16, #tpu.memory_space<vmem>>, vector<32x4xbf16>
      %cst_61 = arith.constant dense<0.000000e+00> : vector<16x4xf32>
      %109 = tpu.matmul %107, %108, %cst_61 {dimension_numbers = #tpu.dot_dimension_numbers<[1], [0], [0], [1], [0, 0, 1, 1], [], []>} : vector<16x32xbf16>, vector<32x4xbf16>, vector<16x4xf32> -> vector<16x4xf32>
      %cst_62 = arith.constant dense<0xFF800000> : vector<16xf32>
      %110 = vector.multi_reduction <maximumf>, %109, %cst_62 [1] : vector<16x4xf32> to vector<16xf32>
      %111 = vector.shape_cast %110 : vector<16xf32> to vector<16x1xf32>
      %112 = vector.broadcast %111 : vector<16x1xf32> to vector<16x4xf32>
      %113 = arith.subf %109, %112 : vector<16x4xf32>
      %114 = math.exp %113 : vector<16x4xf32>
      %cst_63 = arith.constant dense<0.000000e+00> : vector<16xf32>
      %115 = vector.multi_reduction <add>, %114, %cst_63 [1] : vector<16x4xf32> to vector<16xf32>
      %116 = vector.shape_cast %115 : vector<16xf32> to vector<16x1xf32>
      %cst_64 = arith.constant 1.000000e+00 : f32
      %117 = vector.broadcast %cst_64 : f32 to vector<16x1xf32>
      %118 = arith.divf %117, %116 : vector<16x1xf32>
      %119 = vector.broadcast %118 : vector<16x1xf32> to vector<16x4xf32>
      %120 = arith.mulf %114, %119 : vector<16x4xf32>
      %c0_65 = arith.constant 0 : index
      %c0_66 = arith.constant 0 : index
      %121 = vector.load %arg15[%c0_65, %c0_66] : memref<16x4xf32, #tpu.memory_space<vmem>>, vector<16x4xf32>
      tpu.vector_store %arg15[%c0_65, %c0_66], %120 {strides = array<i32>} : memref<16x4xf32, #tpu.memory_space<vmem>>, vector<16x4xf32>,
      %122 = tpu.iota {dimensions = array<i32: 0>} : vector<4x1x4xi32>
      %123 = tpu.iota {dimensions = array<i32: 2>} : vector<4x1x4xi32>
      %124 = arith.cmpi eq, %122, %123 : vector<4x1x4xi32>
      %125 = vector.shape_cast %120 : vector<16x4xf32> to vector<1x16x4xf32>
      %cst_67 = arith.constant 0.000000e+00 : f32
      %126 = vector.shape_cast %124 : vector<4x1x4xi1> to vector<4x1x4xi1>
      %127 = vector.broadcast %126 : vector<4x1x4xi1> to vector<4x16x4xi1>
      %128 = vector.shape_cast %125 : vector<1x16x4xf32> to vector<1x16x4xf32>
      %129 = vector.broadcast %128 : vector<1x16x4xf32> to vector<4x16x4xf32>
      %130 = vector.broadcast %cst_67 : f32 to vector<4x16x4xf32>
      %131 = arith.select %127, %129, %130 : vector<4x16x4xi1>, vector<4x16x4xf32>
      %cst_68 = arith.constant dense<0.000000e+00> : vector<4x16xf32>
      %132 = vector.multi_reduction <add>, %131, %cst_68 [2] : vector<4x16x4xf32> to vector<4x16xf32>
      %133 = vector.shape_cast %132 : vector<4x16xf32> to vector<4x16x1xf32>
      %c0_69 = arith.constant 0 : index
      %c0_70 = arith.constant 0 : index
      %c0_71 = arith.constant 0 : index
      %134 = vector.load %arg18[%c0_69, %c0_70, %c0_71] : memref<4x16x1xf32, #tpu.memory_space<vmem>>, vector<4x16x1xf32>
      tpu.vector_store %arg18[%c0_69, %c0_70, %c0_71], %133 {strides = array<i32>} : memref<4x16x1xf32, #tpu.memory_space<vmem>>, vector<4x16x1xf32>,
    } else {
    }
    %c0_2 = arith.constant 0 : index
    %c0_3 = arith.constant 0 : index
    %c0_4 = arith.constant 0 : index
    %4 = vector.load %arg9[%c0_2, %c0_3, %c0_4] : memref<1x32x32xbf16, #tpu.memory_space<vmem>>, vector<1x32x32xbf16>
    %5 = vector.shape_cast %4 : vector<1x32x32xbf16> to vector<32x32xbf16>
    %c0_5 = arith.constant 0 : index
    %c0_6 = arith.constant 0 : index
    %c0_7 = arith.constant 0 : index
    %6 = vector.load %arg10[%c0_5, %c0_6, %c0_7] : memref<1x1x32xf32, #tpu.memory_space<vmem>>, vector<1x1x32xf32>
    %7 = vector.shape_cast %6 : vector<1x1x32xf32> to vector<1x32xf32>
    %c0_8 = arith.constant 0 : index
    %c0_9 = arith.constant 0 : index
    %c0_10 = arith.constant 0 : index
    %8 = vector.load %arg11[%c0_8, %c0_9, %c0_10] : memref<1x1x32xf32, #tpu.memory_space<vmem>>, vector<1x1x32xf32>
    %9 = vector.shape_cast %8 : vector<1x1x32xf32> to vector<1x32xf32>
    %c0_11 = arith.constant 0 : index
    %c0_12 = arith.constant 0 : index
    %c0_13 = arith.constant 0 : index
    %10 = vector.load %arg12[%c0_11, %c0_12, %c0_13] : memref<1x1x32xf32, #tpu.memory_space<vmem>>, vector<1x1x32xf32>
    %11 = vector.shape_cast %10 : vector<1x1x32xf32> to vector<1x32xf32>
    %cst = arith.constant dense<0.000000e+00> : vector<16x32xf32>
    %12 = tpu.matmul %0, %5, %cst {dimension_numbers = #tpu.dot_dimension_numbers<[1], [0], [0], [1], [0, 0, 1, 1], [], []>} : vector<16x32xbf16>, vector<32x32xbf16>, vector<16x32xf32> -> vector<16x32xf32>
    %13 = vector.broadcast %7 : vector<1x32xf32> to vector<16x32xf32>
    %14 = arith.addf %12, %13 : vector<16x32xf32>
    %cst_14 = arith.constant 0.000000e+00 : f32
    %15 = vector.broadcast %cst_14 : f32 to vector<16x32xf32>
    %16 = arith.maximumf %14, %15 : vector<16x32xf32>
    %cst_15 = arith.constant dense<0.000000e+00> : vector<16xf32>
    %17 = vector.multi_reduction <add>, %16, %cst_15 [1] : vector<16x32xf32> to vector<16xf32>
    %18 = vector.shape_cast %17 : vector<16xf32> to vector<16x1xf32>
    %cst_16 = arith.constant 3.200000e+01 : f32
    %19 = vector.broadcast %cst_16 : f32 to vector<16x1xf32>
    %20 = arith.divf %18, %19 : vector<16x1xf32>
    %21 = vector.broadcast %20 : vector<16x1xf32> to vector<16x32xf32>
    %22 = arith.subf %16, %21 : vector<16x32xf32>
    %23 = arith.mulf %22, %22 : vector<16x32xf32>
    %cst_17 = arith.constant dense<0.000000e+00> : vector<16xf32>
    %24 = vector.multi_reduction <add>, %23, %cst_17 [1] : vector<16x32xf32> to vector<16xf32>
    %25 = vector.shape_cast %24 : vector<16xf32> to vector<16x1xf32>
    %cst_18 = arith.constant 3.200000e+01 : f32
    %26 = vector.broadcast %cst_18 : f32 to vector<16x1xf32>
    %27 = arith.divf %25, %26 : vector<16x1xf32>
    %28 = vector.broadcast %20 : vector<16x1xf32> to vector<16x32xf32>
    %29 = arith.subf %16, %28 : vector<16x32xf32>
    %cst_19 = arith.constant 9.99999996E-13 : f32
    %30 = vector.broadcast %cst_19 : f32 to vector<16x1xf32>
    %31 = arith.addf %27, %30 : vector<16x1xf32>
    %32 = math.rsqrt %31 : vector<16x1xf32>
    %33 = vector.broadcast %32 : vector<16x1xf32> to vector<16x32xf32>
    %34 = arith.mulf %29, %33 : vector<16x32xf32>
    %35 = vector.broadcast %9 : vector<1x32xf32> to vector<16x32xf32>
    %36 = arith.mulf %34, %35 : vector<16x32xf32>
    %37 = vector.broadcast %11 : vector<1x32xf32> to vector<16x32xf32>
    %38 = arith.addf %36, %37 : vector<16x32xf32>
    %39 = arith.truncf %38 : vector<16x32xf32> to vector<16x32xbf16>
    %c0_20 = arith.constant 0 : index
    %c0_21 = arith.constant 0 : index
    %c0_22 = arith.constant 0 : index
    %40 = vector.load %arg13[%c0_20, %c0_21, %c0_22] : memref<1x32x128xbf16, #tpu.memory_space<vmem>>, vector<1x32x128xbf16>
    %41 = vector.shape_cast %40 : vector<1x32x128xbf16> to vector<32x128xbf16>
    %cst_23 = arith.constant dense<0.000000e+00> : vector<16x128xf32>
    %42 = tpu.matmul %39, %41, %cst_23 {dimension_numbers = #tpu.dot_dimension_numbers<[1], [0], [0], [1], [0, 0, 1, 1], [], []>} : vector<16x32xbf16>, vector<32x128xbf16>, vector<16x128xf32> -> vector<16x128xf32>
    %c0_24 = arith.constant 0 : index
    %c0_25 = arith.constant 0 : index
    %c0_26 = arith.constant 0 : index
    %43 = vector.load %arg14[%c0_24, %c0_25, %c0_26] : memref<1x1x128xf32, #tpu.memory_space<vmem>>, vector<1x1x128xf32>
    %44 = vector.shape_cast %43 : vector<1x1x128xf32> to vector<1x128xf32>
    %45 = vector.broadcast %44 : vector<1x128xf32> to vector<16x128xf32>
    %46 = arith.addf %42, %45 : vector<16x128xf32>
    %cst_27 = arith.constant dense<0xFF800000> : vector<16xf32>
    %47 = vector.multi_reduction <maximumf>, %46, %cst_27 [1] : vector<16x128xf32> to vector<16xf32>
    %48 = vector.shape_cast %47 : vector<16xf32> to vector<16x1xf32>
    %49 = vector.broadcast %48 : vector<16x1xf32> to vector<16x128xf32>
    %50 = arith.subf %46, %49 : vector<16x128xf32>
    %51 = math.exp %50 : vector<16x128xf32>
    %cst_28 = arith.constant dense<0.000000e+00> : vector<16xf32>
    %52 = vector.multi_reduction <add>, %51, %cst_28 [1] : vector<16x128xf32> to vector<16xf32>
    %53 = vector.shape_cast %52 : vector<16xf32> to vector<16x1xf32>
    %cst_29 = arith.constant 1.000000e+00 : f32
    %54 = vector.broadcast %cst_29 : f32 to vector<16x1xf32>
    %55 = arith.divf %54, %53 : vector<16x1xf32>
    %56 = vector.broadcast %55 : vector<16x1xf32> to vector<16x128xf32>
    %57 = arith.mulf %51, %56 : vector<16x128xf32>
    %58 = arith.index_cast %arg1 : i32 to index
    %c0_30 = arith.constant 0 : index
    %c0_31 = arith.constant 0 : index
    %59 = vector.load %arg18[%58, %c0_30, %c0_31] : memref<4x16x1xf32, #tpu.memory_space<vmem>>, vector<1x16x1xf32>
    %60 = vector.shape_cast %59 : vector<1x16x1xf32> to vector<16x1xf32>
    %c0_32 = arith.constant 0 : index
    %c0_33 = arith.constant 0 : index
    %61 = vector.load %arg3[%c0_32, %c0_33] : memref<16x1xf32, #tpu.memory_space<vmem>>, vector<16x1xf32>
    %62 = vector.broadcast %61 : vector<16x1xf32> to vector<16x128xf32>
    %63 = arith.mulf %57, %62 : vector<16x128xf32>
    %cst_34 = arith.constant dense<0.000000e+00> : vector<128xf32>
    %64 = vector.multi_reduction <add>, %63, %cst_34 [0] : vector<16x128xf32> to vector<128xf32>
    %65 = vector.shape_cast %64 : vector<128xf32> to vector<1x128xf32>
    %cst_35 = arith.constant 2.500000e-01 : f32
    %66 = vector.broadcast %cst_35 : f32 to vector<1x128xf32>
    %67 = arith.mulf %65, %66 : vector<1x128xf32>
    %68 = vector.shape_cast %67 : vector<1x128xf32> to vector<1x1x1x128xf32>
    %c0_36 = arith.constant 0 : index
    %c0_37 = arith.constant 0 : index
    %c0_38 = arith.constant 0 : index
    %c0_39 = arith.constant 0 : index
    %69 = vector.load %arg17[%c0_36, %c0_37, %c0_38, %c0_39] : memref<1x1x1x128xf32, #tpu.memory_space<vmem>>, vector<1x1x1x128xf32>
    tpu.vector_store %arg17[%c0_36, %c0_37, %c0_38, %c0_39], %68 {strides = array<i32>} : memref<1x1x1x128xf32, #tpu.memory_space<vmem>>, vector<1x1x1x128xf32>,
    %c0_i32_40 = arith.constant 0 : i32
    %70 = arith.cmpi eq, %arg1, %c0_i32_40 : i32
    %71 = arith.extui %70 : i1 to i32
    %c0_i32_41 = arith.constant 0 : i32
    %72 = arith.cmpi ne, %71, %c0_i32_41 : i32
    scf.if %72 {
      %76 = vector.broadcast %60 : vector<16x1xf32> to vector<16x128xf32>
      %77 = arith.mulf %57, %76 : vector<16x128xf32>
      %c0_44 = arith.constant 0 : index
      %c0_45 = arith.constant 0 : index
      %78 = vector.load %arg16[%c0_44, %c0_45] : memref<16x128xf32, #tpu.memory_space<vmem>>, vector<16x128xf32>
      tpu.vector_store %arg16[%c0_44, %c0_45], %77 {strides = array<i32>} : memref<16x128xf32, #tpu.memory_space<vmem>>, vector<16x128xf32>,
    } else {
    }
    %c0_i32_42 = arith.constant 0 : i32
    %73 = arith.cmpi sgt, %arg1, %c0_i32_42 : i32
    %74 = arith.extui %73 : i1 to i32
    %c0_i32_43 = arith.constant 0 : i32
    %75 = arith.cmpi ne, %74, %c0_i32_43 : i32
    scf.if %75 {
      %c0_44 = arith.constant 0 : index
      %c0_45 = arith.constant 0 : index
      %76 = vector.load %arg16[%c0_44, %c0_45] : memref<16x128xf32, #tpu.memory_space<vmem>>, vector<16x128xf32>
      %77 = vector.broadcast %60 : vector<16x1xf32> to vector<16x128xf32>
      %78 = arith.mulf %57, %77 : vector<16x128xf32>
      %79 = arith.addf %76, %78 : vector<16x128xf32>
      %c0_46 = arith.constant 0 : index
      %c0_47 = arith.constant 0 : index
      %80 = vector.load %arg16[%c0_46, %c0_47] : memref<16x128xf32, #tpu.memory_space<vmem>>, vector<16x128xf32>
      tpu.vector_store %arg16[%c0_46, %c0_47], %79 {strides = array<i32>} : memref<16x128xf32, #tpu.memory_space<vmem>>, vector<16x128xf32>,
    } else {
    }
    return
  }
  func.func @transform_0(%arg0: i32, %arg1: i32) -> (i32, i32) {
    %c0_i32 = arith.constant 0 : i32
    %c0_i32_0 = arith.constant 0 : i32
    return %arg0, %c0_i32 : i32, i32
  }
  func.func @transform_1(%arg0: i32, %arg1: i32) -> (i32, i32) {
    %c0_i32 = arith.constant 0 : i32
    %c0_i32_0 = arith.constant 0 : i32
    return %arg0, %c0_i32 : i32, i32
  }
  func.func @transform_2(%arg0: i32, %arg1: i32) -> (i32, i32) {
    %c0_i32 = arith.constant 0 : i32
    %c0_i32_0 = arith.constant 0 : i32
    %c0_i32_1 = arith.constant 0 : i32
    return %c0_i32, %c0_i32_0 : i32, i32
  }
  func.func @transform_3(%arg0: i32, %arg1: i32) -> (i32, i32) {
    %c0_i32 = arith.constant 0 : i32
    %c0_i32_0 = arith.constant 0 : i32
    %c0_i32_1 = arith.constant 0 : i32
    return %c0_i32, %c0_i32_0 : i32, i32
  }
  func.func @transform_4(%arg0: i32, %arg1: i32) -> (i32, i32) {
    %c0_i32 = arith.constant 0 : i32
    %c0_i32_0 = arith.constant 0 : i32
    %c0_i32_1 = arith.constant 0 : i32
    return %c0_i32, %c0_i32_0 : i32, i32
  }
  func.func @transform_5(%arg0: i32, %arg1: i32) -> (i32, i32) {
    %c0_i32 = arith.constant 0 : i32
    %c0_i32_0 = arith.constant 0 : i32
    %c0_i32_1 = arith.constant 0 : i32
    return %c0_i32, %c0_i32_0 : i32, i32
  }
  func.func @transform_6(%arg0: i32, %arg1: i32) -> (i32, i32) {
    %c0_i32 = arith.constant 0 : i32
    %c0_i32_0 = arith.constant 0 : i32
    %c0_i32_1 = arith.constant 0 : i32
    return %c0_i32, %c0_i32_0 : i32, i32
  }
  func.func @transform_7(%arg0: i32, %arg1: i32) -> (i32, i32, i32) {
    %c0_i32 = arith.constant 0 : i32
    %c0_i32_0 = arith.constant 0 : i32
    %c0_i32_1 = arith.constant 0 : i32
    return %arg1, %c0_i32, %c0_i32_0 : i32, i32, i32
  }
  func.func @transform_8(%arg0: i32, %arg1: i32) -> (i32, i32, i32) {
    %c0_i32 = arith.constant 0 : i32
    %c0_i32_0 = arith.constant 0 : i32
    %c0_i32_1 = arith.constant 0 : i32
    return %arg1, %c0_i32, %c0_i32_0 : i32, i32, i32
  }
  func.func @transform_9(%arg0: i32, %arg1: i32) -> (i32, i32, i32) {
    %c0_i32 = arith.constant 0 : i32
    %c0_i32_0 = arith.constant 0 : i32
    %c0_i32_1 = arith.constant 0 : i32
    return %arg1, %c0_i32, %c0_i32_0 : i32, i32, i32
  }
  func.func @transform_10(%arg0: i32, %arg1: i32) -> (i32, i32, i32) {
    %c0_i32 = arith.constant 0 : i32
    %c0_i32_0 = arith.constant 0 : i32
    %c0_i32_1 = arith.constant 0 : i32
    return %arg1, %c0_i32, %c0_i32_0 : i32, i32, i32
  }
  func.func @transform_11(%arg0: i32, %arg1: i32) -> (i32, i32, i32) {
    %c0_i32 = arith.constant 0 : i32
    %c0_i32_0 = arith.constant 0 : i32
    %c0_i32_1 = arith.constant 0 : i32
    return %arg1, %c0_i32, %c0_i32_0 : i32, i32, i32
  }
  func.func @transform_12(%arg0: i32, %arg1: i32) -> (i32, i32, i32) {
    %c0_i32 = arith.constant 0 : i32
    %c0_i32_0 = arith.constant 0 : i32
    %c0_i32_1 = arith.constant 0 : i32
    return %arg1, %c0_i32, %c0_i32_0 : i32, i32, i32
  }
  func.func @transform_13(%arg0: i32, %arg1: i32) -> (i32, i32) {
    %c0_i32 = arith.constant 0 : i32
    %c0_i32_0 = arith.constant 0 : i32
    return %arg0, %c0_i32 : i32, i32
  }
  func.func @transform_14(%arg0: i32, %arg1: i32) -> (i32, i32) {
    %c0_i32 = arith.constant 0 : i32
    %c0_i32_0 = arith.constant 0 : i32
    return %arg0, %c0_i32 : i32, i32
  }
  func.func @transform_15(%arg0: i32, %arg1: i32) -> (i32, i32, i32, i32) {
    %c0_i32 = arith.constant 0 : i32
    %c0_i32_0 = arith.constant 0 : i32
    %c0_i32_1 = arith.constant 0 : i32
    return %arg0, %arg1, %c0_i32, %c0_i32_0 : i32, i32, i32, i32
  }
}

</mosaic_0001>

<bundles_post_ra>
// kernel: model_forward.1
= control target key start
LH: loop header
LB: loop body
LE: loop exit
PB: predicated region body
PF: predicated region fallthrough
CT: control target
= control target key end

     0   :  { %s1684_s18 = smov 0   ;;  %s1686_s19 = smov 0   ;;  %s1883_s0 = inlined_call_operand.vmem [shape: bf16[16,32], index: 0, kind: input, shape index: {}]   ;;  %s1884_s1 = inlined_call_operand.vmem [shape: f32[16,1], index: 1, kind: input, shape index: {}]   ;;  %s1885_s2 = inlined_call_operand.vmem [shape: bf16[32,32], index: 2, kind: input, shape index: {}]   ;;  %s1886_s3 = inlined_call_operand.vmem [shape: f32[1,32], index: 3, kind: input, shape index: {}]   ;;  %s1887_s4 = inlined_call_operand.vmem [shape: f32[1,32], index: 4, kind: input, shape index: {}]   ;;  %s1888_s5 = inlined_call_operand.vmem [shape: f32[1,32], index: 5, kind: input, shape index: {}]   ;;  %s1889_s6 = inlined_call_operand.vmem [shape: bf16[32,4], index: 6, kind: input, shape index: {}]   ;;  %s1890_s7 = inlined_call_operand.vmem [shape: bf16[4,32,32], index: 7, kind: input, shape index: {}]   ;;  %s1891_s8 = inlined_call_operand.vmem [shape: f32[4,1,32], index: 8, kind: input, shape index: {}]   ;;  %s1892_s9 = inlined_call_operand.vmem [shape: f32[4,1,32], index: 9, kind: input, shape index: {}]   ;;  %s1893_s10 = inlined_call_operand.vmem [shape: f32[4,1,32], index: 10, kind: input, shape index: {}]   ;;  %s1894_s11 = inlined_call_operand.vmem [shape: bf16[4,32,128], index: 11, kind: input, shape index: {}]   ;;  %s1895_s12 = inlined_call_operand.vmem [shape: f32[4,1,128], index: 12, kind: input, shape index: {}]   ;;  %s1896_s13 = inlined_call_operand.vmem [shape: f32[16,4], index: 13, kind: output, shape index: {0}]   ;;  %s1897_s14 = inlined_call_operand.vmem [shape: f32[16,128], index: 14, kind: output, shape index: {1}]   ;;  %s1898_s15 = inlined_call_operand.vmem [shape: f32[1,4,1,128], index: 15, kind: output, shape index: {2}]  }
   0x1   :  { %1904 = sst [smem:[#allocation6_spill]] %s1883_s0  ;;  %s1688_s20 = smov 0  }
   0x2   :  { %1905 = sst [smem:[#allocation7_spill]] %s1884_s1 }
   0x3   :  { %1906 = sst [smem:[#allocation8_spill]] %s1890_s7 }
   0x4   :  { %1907 = sst [smem:[#allocation9_spill]] %s1897_s14 }
   0x5 LB: > { %1908 = sst [smem:[#allocation3_spill]] %s1591_s19  ;;  %s35_s21 = sadd.s32 1, %s1591_s19  ;;  %s1595_s20 = sphi %s1688_s20, %s26_s20   ;;  %s1591_s19 = sphi %s1686_s19, %s1919_s19   ;;  %s1587_s18 = sphi %s1684_s18, %s1918_s18  }
   0x6   : > { %1909 = sst [smem:[#allocation4_spill]] %s1595_s20  ;;  %p1424_p0 = scmp.ge.s32.totalorder %s1595_s20, 1 }
   0x7   : > { %p36_p1 = scmp.ge.s32.totalorder %s35_s21, 4  ;;  %p520_p2 = scmp.lt.s32.totalorder %s1595_s20, 5 }
   0x9   : > { %s1921_s21 = smov (%p36_p1, %s35_s21), 0  ;;  %p521_p3 = pnand %p1424_p0, %p520_p2 }
   0xa   : > { %1910 = sst [smem:[#allocation5_spill]] %s1921_s21  ;;  %p619_p4 = scmp.lt.s32.totalorder (!%p521_p3), %s1587_s18, 3 }
   0xb   : > { %524 = sbr.rel (%p521_p3) target bundleno = 2479 (0x9af), region = 72  ;;  %s1911_s0 = sld [smem:[#allocation6_spill]] (!%p521_p3) }
   0xc   : > { %s1912_s7 = sld [smem:[#allocation8_spill]] (!%p521_p3)  ;;  %p1429_p5 = scmp.ne.s32.totalorder (!%p521_p3), %s1587_s18, 0 }
  0x11   : > { %v1708_v0 = vld [vmem:[%s1911_s0] sm:$0xf] (!%p521_p3)  ;;  %v1713_v1 = vld [vmem:[%s1911_s0 + $0x4] sm:$0xf] (!%p521_p3) }
  0x12   : > { %s1716_s26 = scalar_select %p619_p4, %s1587_s18, 3 }
  0x13   : > { %666 = sbr.rel (%p1429_p5) target bundleno = 1248 (0x4e0), region = 76  ;;  %v1537_v2 = vld [vmem:[%s1885_s2] sm:$0xff] (!%p1429_p5)   ;;  %v1597_v3 = vmov (!%p1429_p5), 0.0   ;;  %v1538_v4 = vld [vmem:[%s1885_s2 + $0x8] sm:$0xff] (!%p1429_p5)   ;;  %vm1598_vm0 = vmmov (!%p1429_p5), 0   ;;  %v1431_v5 = vcombine.low (!%p1429_p5), %v1708_v0, %v1713_v1  ;;  %vm697_vm1 = vcmask (!%p1429_p5), 261120  }
  0x14   : > { %s1460_s27 = sshll.u32 %s1716_s26, 4  ;;  %s629_s25 = scalar_lea.vmem %s1892_s9, %s1716_s26  ;;  %1474 = vmatprep.subr.bf16.mxu0 (!%p1429_p5), %v1597_v3  ;;  %1482 = vmatprep.subr.bf16.mxu1 (!%p1429_p5), %v1597_v3  ;;  %v1430_v6 = vld [vmem:[%s1886_s3] ss:$0 sm:$0xff] (!%p1429_p5)  ;;  %v1540_v28 = vld [vmem:[%s1889_s6 + $0x8] sm:$0xff] (!%p1429_p5)   ;;  %vm848_vm2 = vcmask (!%p1429_p5), 31744   ;;  %vm921_vm7 = vcmask (!%p1429_p5), 7168  }
  0x15   : > { %s1726_s22 = scalar_lea.vmem %s1912_s7, %s1460_s27  ;;  %s632_s19 = scalar_lea.vmem %s1893_s10, %s1716_s26  ;;  %1475 = vmatpush3.bf16.msra.mxu0 (!%p1429_p5), %v1537_v2  ;;  %1478 = vmatprep.mubr.msk.bf16.mxu0 (!%p1429_p5), %vm1598_vm0, %v1597_v3  ;;  %v1539_v27 = vld [vmem:[%s1889_s6] sm:$0xff] (!%p1429_p5)   ;;  %v875_v2 = vlaneseq (!%p1429_p5) }
  0x16   : > { %s1739_s1 = scalar_lea.vmem %s1894_s11, %s1460_s27  ;;  %s640_s30 = scalar_lea.vmem %s1895_s12, %s1716_s26  ;;  %1476 = vmatprep.subr.bf16.mxu0 (!%p1429_p5), %v1597_v3  ;;  %1486 = vmatprep.mubr.msk.bf16.mxu1 (!%p1429_p5), %vm1598_vm0, %v1597_v3  ;;  %v1435_v37 = vld [vmem:[%s1887_s4] ss:$0 sm:$0xff] (!%p1429_p5) }
  0x17   : > { %s659_s7 = scalar_lea.vmem %s1898_s15, %s1716_s26  ;;  %1483 = vmatpush3.bf16.msra.mxu1 (!%p1429_p5), %v1539_v27  ;;  %v1436_v41 = vld [vmem:[%s1888_s5] ss:$0 sm:$0xff] (!%p1429_p5) }
  0x18   : > { %1484 = vmatprep.subr.bf16.mxu1 (!%p1429_p5), %v1597_v3  ;;  %v876_v3 = vand.u32 (!%p1429_p5), 127, %v875_v2 }
  0x19   : > { %1477 = vmatpush3.bf16.msra.mxu0 (!%p1429_p5), %v1538_v4 }
  0x1a   : > { %vm877_vm3 = vcmp.eq.s32.totalorder %v876_v3, 0  ;;  %vm878_vm4 = vcmp.eq.s32.totalorder %v876_v3, 1  ;;  %vm879_vm5 = vcmp.eq.s32.totalorder %v876_v3, 2  ;;  %vm880_vm6 = vcmp.eq.s32.totalorder %v876_v3, 3 }
  0x1b   : > { %1485 = vmatpush3.bf16.msra.mxu1 %v1540_v28 }
  0x1c   : > { %1479 = vmatmul.mubr.msk.bf16.vlgmr.msra.gmra.mrb[0].mxu0 %vm697_vm1, %v1431_v5 }
  0xef   : > { %v735_v7 = vpop.f32.mrb[0].mxu0 }
  0xf0   : > { %v736_v8 = vadd.f32 %v1430_v6, %v735_v7  ;;  %v1480_v9 = vpop.f32.mrb[1].mxu0 }
  0xf1   : > { %v738_v10 = vpop.f32.mrb[2].mxu0 }
  0xf2   : > { %v742_v11 = vmax.f32 %v736_v8, 0.0  ;;  %v739_v12 = vadd.f32 %v1430_v6, %v738_v10  ;;  %v1481_v13 = vpop.f32.mrb[3].mxu0 }
  0xf4   : > { %v743_v14 = vmax.f32 %v739_v12, 0.0  ;;  %v744_v15 = vsel %vm697_vm1, %v742_v11, 0.0 }
  0xf5   : > { %745 = vadd.xlane.f32.xlu0 %v744_v15 }
  0xf6   : > { %v747_v16 = vsel %vm697_vm1, %v743_v14, 0.0 }
  0xf9   : > { %748 = vadd.xlane.f32.xlu0 %v747_v16 }
 0x182   : > { %v746_v17 = vpop.xlane.xlu0 %745 }
 0x183   : > { %v751_v18 = vmul.f32 0.03125, %v746_v17 }
 0x185   : > { %v753_v19 = vsub.f32 %v742_v11, %v751_v18 }
 0x186   : > { %v749_v20 = vpop.xlane.xlu0 %748 }
 0x187   : > { %v752_v21 = vmul.f32 0.03125, %v749_v20  ;;  %v755_v22 = vmul.f32 %v753_v19, %v753_v19 }
 0x189   : > { %v754_v23 = vsub.f32 %v743_v14, %v752_v21  ;;  %v757_v24 = vsel %vm697_vm1, %v755_v22, 0.0 }
 0x18a   : > { %758 = vadd.xlane.f32.xlu1 %v757_v24 }
 0x18b   : > { %v756_v25 = vmul.f32 %v754_v23, %v754_v23 }
 0x18d   : > { %v760_v26 = vsel %vm697_vm1, %v756_v25, 0.0 }
 0x18e   : > { %761 = vadd.xlane.f32.xlu1 %v760_v26 }
 0x217   : > { %v759_v29 = vpop.xlane.xlu1 %758 }
 0x218   : > { %v763_v30 = vmul.f32 0.03125, %v759_v29 }
 0x21a   : > { %v765_v31 = vadd.f32 1e-12, %v763_v30 }
 0x21b   : > { %v762_v32 = vpop.xlane.xlu1 %761 }
 0x21c   : > { %1541 = vrsqrt.f32 %v765_v31  ;;  %v764_v33 = vmul.f32 0.03125, %v762_v32 }
 0x21e   : > { %v766_v34 = vadd.f32 1e-12, %v764_v33 }
 0x220   : > { %1543 = vrsqrt.f32 %v766_v34 }
 0x226   : > { %v1542_v35 = vpop.eup %1541 }
 0x227   : > { %v769_v36 = vmul.f32 %v1542_v35, %v753_v19 }
 0x229   : > { %v777_v40 = vmul.f32 %v1435_v37, %v769_v36 }
 0x22a   : > { %v1544_v38 = vpop.eup %1543 }
 0x22b   : > { %v770_v39 = vmul.f32 %v1544_v38, %v754_v23  ;;  %v785_v43 = vadd.f32 %v1436_v41, %v777_v40 }
 0x22d   : > { %v778_v42 = vmul.f32 %v1435_v37, %v770_v39 }
 0x22f   : > { %v786_v44 = vadd.f32 %v1436_v41, %v778_v42 }
 0x231   : > { %v787_v45 = vpack.c.bf16 %v786_v44, %v785_v43 }
 0x233   : > { %1487 = vmatmul.mubr.msk.bf16.vlgmr.msra.gmra.mrb[0].mxu1 %vm697_vm1, %v787_v45 }
 0x306   : > { %v841_v46 = vpop.f32.mrb[0].mxu1 }
 0x307   : > { %v1488_v47 = vpop.f32.mrb[1].mxu1  ;;  %v849_v48 = vsel %vm848_vm2, %v841_v46, -inf }
 0x308   : > { %850 = vmax.xlane.f32.xlu0 %v849_v48  ;;  %v844_v49 = vpop.f32.mrb[2].mxu1 }
 0x309   : > { %v1489_v50 = vpop.f32.mrb[3].mxu1  ;;  %v852_v51 = vsel %vm848_vm2, %v844_v49, -inf }
 0x30a   : > { %853 = vmax.xlane.f32.xlu1 %v852_v51 }
 0x395   : > { %v851_v52 = vpop.xlane.xlu0 %850 }
 0x396   : > { %v855_v53 = vsub.f32 %v841_v46, %v851_v52 }
 0x397   : > { %v854_v54 = vpop.xlane.xlu1 %853 }
 0x398   : > { %v857_v55 = vmul.f32 1.442695, %v855_v53  ;;  %v856_v56 = vsub.f32 %v844_v49, %v854_v54 }
 0x39a   : > { %1545 = vpow2.f32 %v857_v55  ;;  %v859_v57 = vmul.f32 1.442695, %v856_v56 }
 0x39c   : > { %1547 = vpow2.f32 %v859_v57 }
 0x3a4   : > { %v1546_v58 = vpop.eup %1545 }
 0x3a5   : > { %v861_v59 = vsel %vm848_vm2, %v1546_v58, 0.0 }
 0x3a6   : > { %v1548_v60 = vpop.eup %1547  ;;  %862 = vadd.xlane.f32.xlu0 %v861_v59 }
 0x3a7   : > { %v864_v61 = vsel %vm848_vm2, %v1548_v60, 0.0 }
 0x3a8   : > { %865 = vadd.xlane.f32.xlu1 %v864_v61 }
 0x433   : > { %v863_v62 = vpop.xlane.xlu0 %862 }
 0x434   : > { %1549 = vrcp.f32 %v863_v62 }
 0x435   : > { %v866_v63 = vpop.xlane.xlu1 %865 }
 0x436   : > { %1551 = vrcp.f32 %v866_v63 }
 0x43e   : > { %v1550_v4 = vpop.eup %1549 }
 0x43f   : > { %v871_v5 = vmul.f32 %v1550_v4, %v1546_v58 }
 0x440   : > { %v1552_v6 = vpop.eup %1551 }
 0x441   : > { %873 = vst.msk [vmem:[%s1896_s13] sm:$0xff] %vm848_vm2, %v871_v5  ;;  %v872_v7 = vmul.f32 %v1552_v6, %v1548_v60  ;;  %v889_v8 = vsel %vm877_vm3, %v871_v5, 0.0  ;;  %v891_v11 = vsel %vm878_vm4, %v871_v5, 0.0  ;;  %v893_v15 = vsel %vm879_vm5, %v871_v5, 0.0 }
 0x442   : > { %v897_v9 = vsel %vm848_vm2, %v889_v8, 0.0  ;;  %v903_v14 = vsel %vm848_vm2, %v891_v11, 0.0  ;;  %v909_v18 = vsel %vm848_vm2, %v893_v15, 0.0  ;;  %v895_v19 = vsel %vm880_vm6, %v871_v5, 0.0 }
 0x443   : > { %874 = vst.msk [vmem:[%s1896_s13 + $0x8] sm:$0xff] %vm848_vm2, %v872_v7  ;;  %898 = vadd.xlane.f32.xlu0 %v897_v9  ;;  %v890_v10 = vsel %vm877_vm3, %v872_v7, 0.0  ;;  %v892_v13 = vsel %vm878_vm4, %v872_v7, 0.0  ;;  %v894_v17 = vsel %vm879_vm5, %v872_v7, 0.0  ;;  %v896_v21 = vsel %vm880_vm6, %v872_v7, 0.0 }
 0x444   : > { %v900_v12 = vsel %vm848_vm2, %v890_v10, 0.0  ;;  %v906_v16 = vsel %vm848_vm2, %v892_v13, 0.0  ;;  %v912_v20 = vsel %vm848_vm2, %v894_v17, 0.0  ;;  %v915_v22 = vsel %vm848_vm2, %v895_v19, 0.0 }
 0x445   : > { %901 = vadd.xlane.f32.xlu1 %v900_v12  ;;  %v918_v23 = vsel %vm848_vm2, %v896_v21, 0.0 }
 0x447   : > { %904 = vadd.xlane.f32.xlu0 %v903_v14 }
 0x449   : > { %907 = vadd.xlane.f32.xlu1 %v906_v16 }
 0x44b   : > { %910 = vadd.xlane.f32.xlu0 %v909_v18 }
 0x44d   : > { %913 = vadd.xlane.f32.xlu1 %v912_v20 }
 0x44f   : > { %916 = vadd.xlane.f32.xlu0 %v915_v22 }
 0x451   : > { %919 = vadd.xlane.f32.xlu1 %v918_v23 }
 0x4d0   : > { %v899_v24 = vpop.xlane.xlu0 %898 }
 0x4d1   : > { %922 = vst.msk [vmem:[#allocation2] sm:$0xff] %vm921_vm7, %v899_v24 }
 0x4d2   : > { %v902_v25 = vpop.xlane.xlu1 %901 }
 0x4d3   : > { %923 = vst.msk [vmem:[#allocation2 + $0x8] sm:$0xff] %vm921_vm7, %v902_v25 }
 0x4d4   : > { %v905_v26 = vpop.xlane.xlu0 %904 }
 0x4d5   : > { %924 = vst.msk [vmem:[#allocation2 + $0x10] sm:$0xff] %vm921_vm7, %v905_v26 }
 0x4d6   : > { %v908_v27 = vpop.xlane.xlu1 %907 }
 0x4d7   : > { %925 = vst.msk [vmem:[#allocation2 + $0x18] sm:$0xff] %vm921_vm7, %v908_v27 }
 0x4d8   : > { %v911_v28 = vpop.xlane.xlu0 %910 }
 0x4d9   : > { %926 = vst.msk [vmem:[#allocation2 + $0x20] sm:$0xff] %vm921_vm7, %v911_v28 }
 0x4da   : > { %v914_v29 = vpop.xlane.xlu1 %913 }
 0x4db   : > { %927 = vst.msk [vmem:[#allocation2 + $0x28] sm:$0xff] %vm921_vm7, %v914_v29 }
 0x4dc   : > { %v917_v30 = vpop.xlane.xlu0 %916 }
 0x4dd   : > { %928 = vst.msk [vmem:[#allocation2 + $0x30] sm:$0xff] %vm921_vm7, %v917_v30 }
 0x4de   : > { %v920_v31 = vpop.xlane.xlu1 %919 }
 0x4df   : > { %929 = vst.msk [vmem:[#allocation2 + $0x38] sm:$0xff] %vm921_vm7, %v920_v31 }
 0x4e0 PF: > { %v1555_v32 = vld [vmem:[%s1726_s22] sm:$0xff]   ;;  %v1599_v33 = vmov 0.0   ;;  %v1556_v34 = vld [vmem:[%s1726_s22 + $0x8] sm:$0xff]   ;;  %vm1600_vm8 = vmmov 0   ;;  %v1441_v35 = vcombine.low %v1708_v0, %v1713_v1  ;;  %vm960_vm9 = vcmask 261120   ;;  %s1913_s16 = scalar_lea.vmem %s1891_s8, %s1716_s26  ;;  %s1451_s23 = sshll.u32 %s1587_s18, 4 }
 0x4e1   : > { %1490 = vmatprep.subr.bf16.mxu0 %v1599_v33  ;;  %1498 = vmatprep.subr.bf16.mxu1 %v1599_v33  ;;  %v1440_v36 = vld [vmem:[%s1913_s16] ss:$0 sm:$0xff]  ;;  %v1558_v56 = vld [vmem:[%s1739_s1 + $0x8] sm:$0xff]   ;;  %v1601_v19 = vmov 0   ;;  %s1139_s24 = scalar_lea.vmem [#allocation2], %s1451_s23  ;;  %s1915_s17 = sld [smem:[#allocation9_spill]] (!%p1429_p5) }
 0x4e2   : > { %1491 = vmatpush3.bf16.msra.mxu0 %v1555_v32  ;;  %1494 = vmatprep.mubr.msk.bf16.mxu0 %vm1600_vm8, %v1599_v33  ;;  %v1557_v55 = vld [vmem:[%s1739_s1] sm:$0xff]  }
 0x4e3   : > { %1492 = vmatprep.subr.bf16.mxu0 %v1599_v33  ;;  %1502 = vmatprep.mubr.msk.bf16.mxu1 %vm1600_vm8, %v1599_v33  ;;  %v1445_v3 = vld [vmem:[%s629_s25] ss:$0 sm:$0xff]  ;;  %s1914_s25 = sld [smem:[#allocation7_spill]] }
 0x4e4   : > { %1499 = vmatpush3.bf16.msra.mxu1 %v1557_v55  ;;  %v1446_v7 = vld [vmem:[%s632_s19] ss:$0 sm:$0xff]  ;;  %1553 = vset.pattern.permute.xlu0 %v1601_v19 }
 0x4e5   : > { %1500 = vmatprep.subr.bf16.mxu1 %v1599_v33  ;;  %v1447_v12 = vld [vmem:[%s640_s30] ss:$0 sm:$0xff]  ;;  %1554 = vset.pattern.permute.xlu1 %v1601_v19 }
 0x4e6   : > { %1493 = vmatpush3.bf16.msra.mxu0 %v1556_v34  ;;  %v1140_v30 = vld [vmem:[%s1139_s24] sm:$0xff]  ;;  %v1141_v31 = vld [vmem:[%s1139_s24 + $0x8] sm:$0xff] }
 0x4e8   : > { %1501 = vmatpush3.bf16.msra.mxu1 %v1558_v56 }
 0x4e9   : > { %1495 = vmatmul.mubr.msk.bf16.vlgmr.msra.gmra.mrb[0].mxu0 %vm960_vm9, %v1441_v35  ;;  %v1143_v28 = vld [vmem:[%s1914_s25 + $0x8] sm:$0xff]  ;;  %v1142_v29 = vld [vmem:[%s1914_s25] sm:$0xff] }
 0x5bc   : > { %v998_v37 = vpop.f32.mrb[0].mxu0 }
 0x5bd   : > { %v999_v38 = vadd.f32 %v1440_v36, %v998_v37  ;;  %v1496_v39 = vpop.f32.mrb[1].mxu0 }
 0x5be   : > { %v1001_v40 = vpop.f32.mrb[2].mxu0 }
 0x5bf   : > { %v1005_v41 = vmax.f32 %v999_v38, 0.0  ;;  %v1002_v42 = vadd.f32 %v1440_v36, %v1001_v40  ;;  %v1497_v43 = vpop.f32.mrb[3].mxu0 }
 0x5c1   : > { %v1006_v44 = vmax.f32 %v1002_v42, 0.0  ;;  %v1007_v45 = vsel %vm960_vm9, %v1005_v41, 0.0 }
 0x5c2   : > { %1008 = vadd.xlane.f32.xlu0 %v1007_v45 }
 0x5c3   : > { %v1010_v0 = vsel %vm960_vm9, %v1006_v44, 0.0 }
 0x5c6   : > { %1011 = vadd.xlane.f32.xlu0 %v1010_v0 }
 0x64f   : > { %v1009_v1 = vpop.xlane.xlu0 %1008 }
 0x650   : > { %v1014_v46 = vmul.f32 0.03125, %v1009_v1 }
 0x652   : > { %v1016_v47 = vsub.f32 %v1005_v41, %v1014_v46 }
 0x653   : > { %v1012_v48 = vpop.xlane.xlu0 %1011 }
 0x654   : > { %v1015_v49 = vmul.f32 0.03125, %v1012_v48  ;;  %v1018_v50 = vmul.f32 %v1016_v47, %v1016_v47  ;;  %v1602_v48 = vmov (!%p1429_p5), 0  }
 0x656   : > { %v1017_v51 = vsub.f32 %v1006_v44, %v1015_v49  ;;  %v1020_v52 = vsel %vm960_vm9, %v1018_v50, 0.0 }
 0x657   : > { %1021 = vadd.xlane.f32.xlu1 %v1020_v52 }
 0x658   : > { %v1019_v53 = vmul.f32 %v1017_v51, %v1017_v51 }
 0x65a   : > { %v1023_v54 = vsel %vm960_vm9, %v1019_v53, 0.0 }
 0x65b   : > { %1024 = vadd.xlane.f32.xlu1 %v1023_v54 }
 0x6e4   : > { %v1022_v57 = vpop.xlane.xlu1 %1021 }
 0x6e5   : > { %v1026_v58 = vmul.f32 0.03125, %v1022_v57 }
 0x6e7   : > { %v1028_v59 = vadd.f32 1e-12, %v1026_v58 }
 0x6e8   : > { %v1025_v60 = vpop.xlane.xlu1 %1024 }
 0x6e9   : > { %1559 = vrsqrt.f32 %v1028_v59  ;;  %v1027_v61 = vmul.f32 0.03125, %v1025_v60 }
 0x6eb   : > { %v1029_v62 = vadd.f32 1e-12, %v1027_v61 }
 0x6ed   : > { %1561 = vrsqrt.f32 %v1029_v62 }
 0x6f3   : > { %v1560_v63 = vpop.eup %1559 }
 0x6f4   : > { %v1032_v2 = vmul.f32 %v1560_v63, %v1016_v47 }
 0x6f6   : > { %v1040_v6 = vmul.f32 %v1445_v3, %v1032_v2 }
 0x6f7   : > { %v1562_v4 = vpop.eup %1561 }
 0x6f8   : > { %v1033_v5 = vmul.f32 %v1562_v4, %v1017_v51  ;;  %v1048_v9 = vadd.f32 %v1446_v7, %v1040_v6 }
 0x6fa   : > { %v1041_v8 = vmul.f32 %v1445_v3, %v1033_v5 }
 0x6fc   : > { %v1049_v10 = vadd.f32 %v1446_v7, %v1041_v8 }
 0x6fe   : > { %v1050_v11 = vpack.c.bf16 %v1049_v10, %v1048_v9 }
 0x700   : > { %1503 = vmatmul.mubr.msk.bf16.vlgmr.msra.gmra.mrb[0].mxu1 %vm960_vm9, %v1050_v11 }
 0x7d3   : > { %v1111_v13 = vpop.f32.mrb[0].mxu1 }
 0x7d4   : > { %v1112_v14 = vadd.f32 %v1447_v12, %v1111_v13  ;;  %v1504_v15 = vpop.f32.mrb[1].mxu1 }
 0x7d5   : > { %v1114_v16 = vpop.f32.mrb[2].mxu1 }
 0x7d6   : > { %v1115_v17 = vadd.f32 %v1447_v12, %v1114_v16  ;;  %1118 = vmax.xlane.f32.xlu0 %v1112_v14  ;;  %v1505_v18 = vpop.f32.mrb[3].mxu1 }
 0x7d8   : > { %1120 = vmax.xlane.f32.xlu1 %v1115_v17 }
 0x863   : > { %v1119_v20 = vpop.xlane.xlu0 %1118 }
 0x864   : > { %v1122_v21 = vsub.f32 %v1112_v14, %v1119_v20 }
 0x865   : > { %v1121_v22 = vpop.xlane.xlu1 %1120 }
 0x866   : > { %v1124_v23 = vmul.f32 1.442695, %v1122_v21  ;;  %v1123_v24 = vsub.f32 %v1115_v17, %v1121_v22 }
 0x868   : > { %1563 = vpow2.f32 %v1124_v23  ;;  %v1126_v25 = vmul.f32 1.442695, %v1123_v24 }
 0x86a   : > { %1565 = vpow2.f32 %v1126_v25 }
 0x872   : > { %v1564_v26 = vpop.eup %1563 }
 0x873   : > { %1128 = vadd.xlane.f32.xlu0 %v1564_v26 }
 0x874   : > { %v1566_v27 = vpop.eup %1565 }
 0x875   : > { %1130 = vadd.xlane.f32.xlu1 %v1566_v27 }
 0x886   : > { %1151 = vperm.xlu1 %1554, %v1143_v28  }
 0x889   : > { %1146 = vperm.xlu0 %1553, %v1142_v29  }
 0x88d   : > { %1571 = vset.pattern.permute.xlu0 (!%p1429_p5), %v1602_v48 }
 0x88e   : > { %1170 = vperm.xlu0 (!%p1429_p5), %1571, %v1140_v30  }
 0x892   : > { %1175 = vperm.xlu0 (!%p1429_p5), %1571, %v1141_v31  }
 0x900   : > { %v1129_v32 = vpop.xlane.xlu0 %1128 }
 0x901   : > { %1567 = vrcp.f32 %v1129_v32 }
 0x902   : > { %v1131_v33 = vpop.xlane.xlu1 %1130 }
 0x903   : > { %1569 = vrcp.f32 %v1131_v33 }
 0x906   : > { %v1152_v38 = vpop.permute.xlu1 %1151 }
 0x908   : > { %v1147_v37 = vpop.permute.xlu0 %1146 }
 0x90b   : > { %v1568_v34 = vpop.eup %1567 }
 0x90c   : > { %v1136_v35 = vmul.f32 %v1568_v34, %v1564_v26 }
 0x90d   : > { %v1570_v36 = vpop.eup %1569  ;;  %v1171_v49 = vpop.permute.xlu0 (!%p1429_p5), %1170 }
 0x90e   : > { %v1137_v39 = vmul.f32 %v1570_v36, %v1566_v27  ;;  %v1154_v40 = vmul.f32 %v1147_v37, %v1136_v35  ;;  %v1178_v50 = vmul.f32 (!%p1429_p5), %v1171_v49, %v1136_v35 }
 0x910   : > { %v1155_v41 = vmul.f32 %v1152_v38, %v1137_v39  ;;  %1180 = vst [vmem:[%s1915_s17] sm:$0xff] (!%p1429_p5), %v1178_v50 }
 0x911   : > { %v1176_v51 = vpop.permute.xlu0 (!%p1429_p5), %1175 }
 0x912   : > { %v1156_v42 = vadd.f32 %v1155_v41, %v1154_v40  ;;  %v1179_v52 = vmul.f32 (!%p1429_p5), %v1176_v51, %v1137_v39 }
 0x914   : > { %v1157_v43 = vrot.slane %v1156_v42, 4  ;;  %1181 = vst [vmem:[%s1915_s17 + $0x8] sm:$0xff] (!%p1429_p5), %v1179_v52 }
 0x916   : > { %v1158_v44 = vadd.f32 %v1157_v43, %v1156_v42 }
 0x918   : > { %v1159_v45 = vrot.slane %v1158_v44, 2 }
 0x91a   : > { %v1160_v0 = vadd.f32 %v1159_v45, %v1158_v44 }
 0x91c   : > { %v1161_v1 = vrot.slane %v1160_v0, 1  ;;  %1167 = sbr.rel (%p1429_p5) target bundleno = 2339 (0x923), region = 80 }
 0x91e   : > { %v1162_v46 = vadd.f32 %v1161_v1, %v1160_v0 }
 0x920   : > { %v1163_v47 = vmul.f32 0.25, %v1162_v46 }
 0x922   : > { %1164 = vst [vmem:[%s659_s7] sm:$0x1] %v1163_v47 }
 0x923 PF: > { %p1453_p6 = scmp.le.s32.totalorder %s1587_s18, 0 }
 0x924   : > { %v1603_v53 = vmov (!%p1453_p6), 0   ;;  %s1916_s21 = sld [smem:[#allocation9_spill]] (!%p1453_p6) }
 0x925   : > { %1185 = sbr.rel (%p1453_p6) target bundleno = 2479 (0x9af), region = 84  ;;  %1572 = vset.pattern.permute.xlu0 (!%p1453_p6), %v1603_v53 }
 0x926   : > { %1190 = vperm.xlu0 (!%p1453_p6), %1572, %v1140_v30  }
 0x92a   : > { %1195 = vperm.xlu0 (!%p1453_p6), %1572, %v1141_v31   ;;  %v1186_v55 = vld [vmem:[%s1916_s21] sm:$0xff] (!%p1453_p6)  ;;  %v1187_v59 = vld [vmem:[%s1916_s21 + $0x8] sm:$0xff] (!%p1453_p6) }
 0x9a5   : > { %v1191_v54 = vpop.permute.xlu0 %1190 }
 0x9a6   : > { %v1198_v56 = vmul.f32 %v1191_v54, %v1136_v35 }
 0x9a8   : > { %v1200_v57 = vadd.f32 %v1198_v56, %v1186_v55 }
 0x9a9   : > { %v1196_v58 = vpop.permute.xlu0 %1195 }
 0x9aa   : > { %1202 = vst [vmem:[%s1916_s21] sm:$0xff] %v1200_v57  ;;  %v1199_v60 = vmul.f32 %v1196_v58, %v1137_v39 }
 0x9ac   : > { %v1201_v61 = vadd.f32 %v1199_v60, %v1187_v59 }
 0x9ae   : > { %1203 = vst [vmem:[%s1916_s21 + $0x8] sm:$0xff] %v1201_v61 }
 0x9af PF: > { %s1917_s23 = sld [smem:[#allocation4_spill]]  ;;  %s1918_s18 = sld [smem:[#allocation3_spill]] }
 0x9b0   : > { %s1919_s19 = sld [smem:[#allocation5_spill]] }
 0x9b5   : > { %s26_s20 = sadd.s32 1, %s1917_s23  }
 0x9b6   : > { %p23_p7 = scmp.ge.s32.totalorder %s26_s20, 6  }
 0x9b8   :  { %25 = sbr.rel (!%p23_p7) target bundleno = 5 (0x5), region = 160 }

</bundles_post_ra>
